<compile_context>
chip_gen: v5e
topology: v5e:2x2
jax: 0.10.0
libtpu: 0.0.40
codegen_flags: <defaults>
</compile_context>

<pallas_src>
import functools

import jax
import jax.numpy as jnp
from jax.experimental import pallas as pl
from jax.experimental.pallas import tpu as pltpu

IN_FEATURES = 512
LANE = 128        # pad class dim to one full lane group
SUBLANE = 8       # batch tiles must be sublane-aligned


def _round_up(x, m):
    return ((x + m - 1) // m) * m


def _linear_kernel(x_ref, w_ref, b_ref, o_ref):
    # x_ref: [TB, K], w_ref: [K, CP], b_ref: [1, CP], o_ref: [TB, CP]
    acc = jnp.dot(x_ref[...], w_ref[...], preferred_element_type=jnp.float32)
    o_ref[...] = (acc + b_ref[...]).astype(o_ref.dtype)


def prepare_linear_params(weight, bias):
    """One-time parameter prep (hoisted out of the per-call path).

    weight: [C, K] (PyTorch nn.Linear layout), bias: [C].
    Returns (w_t_padded [K, CP], b_padded [1, CP], C).
    """
    C, K = weight.shape
    assert K == IN_FEATURES
    CP = _round_up(max(C, 1), LANE)
    w_t = jnp.zeros((K, CP), dtype=weight.dtype).at[:, :C].set(weight.T)
    b2d = jnp.zeros((1, CP), dtype=bias.dtype).at[0, :C].set(bias)
    return w_t, b2d, C


@functools.partial(jax.jit, static_argnames=("num_classes",))
def linear_classifier_apply(features, w_t_padded, b_padded, num_classes):
    """features: [B, 512]; w_t_padded: [512, CP]; b_padded: [1, CP]."""
    B, K = features.shape
    CP = w_t_padded.shape[1]

    # Choose a batch tile: 512 rows when the batch is large (good HBM-roofline
    # tile, safe for v7x's 64 MiB VMEM), otherwise the whole (sublane-padded)
    # batch in one block.
    if B >= 512:
        TB = 512
    else:
        TB = _round_up(B, SUBLANE)
    B_pad = _round_up(B, TB)

    if B_pad != B:
        features = jnp.pad(features, ((0, B_pad - B), (0, 0)))

    out_padded = pl.pallas_call(
        _linear_kernel,
        out_shape=jax.ShapeDtypeStruct((B_pad, CP), features.dtype),
        grid=(B_pad // TB,),
        in_specs=[
            pl.BlockSpec((TB, K), lambda i: (i, 0)),   # streamed per step
            pl.BlockSpec((K, CP), lambda i: (0, 0)),   # resident weight
            pl.BlockSpec((1, CP), lambda i: (0, 0)),   # resident bias
        ],
        out_specs=pl.BlockSpec((TB, CP), lambda i: (i, 0)),
        compiler_params=pltpu.CompilerParams(
            dimension_semantics=("parallel",),
        ),
    )(features, w_t_padded, b_padded)

    # Undo batch + class padding in plain JAX.
    return out_padded[:B, :num_classes]


def linear_classifier(features, weight, bias):
    """Convenience wrapper matching nn.Linear(512, C) forward semantics."""
    w_t_padded, b_padded, C = prepare_linear_params(weight, bias)
    return linear_classifier_apply(features, w_t_padded, b_padded, C)


if __name__ == "__main__":
    num_classes = 4
    in_features = IN_FEATURES
    batch = 2

    key = jax.random.PRNGKey(0)
    kx, kw, kb = jax.random.split(key, 3)

    # Deterministic synthetic parameters (match nn.Linear(512, 4) shapes).
    features = jax.random.normal(kx, (batch, in_features), dtype=jnp.float32)
    weight = jax.random.normal(kw, (num_classes, in_features), dtype=jnp.float32) * 0.02
    bias = jax.random.normal(kb, (num_classes,), dtype=jnp.float32) * 0.02

    out = linear_classifier(features, weight, bias)
    out = jax.block_until_ready(out)

    # Reference check against plain JAX (same semantics as torch nn.Linear).
    ref = features @ weight.T + bias
    assert out.shape == (batch, num_classes)
    assert jnp.allclose(out, ref, atol=1e-4, rtol=1e-4)

    # Also exercise a larger, tiled batch to validate the pipelined path.
    big_b = 1536
    big_feats = jax.random.normal(jax.random.PRNGKey(1), (big_b, in_features),
                                  dtype=jnp.float32)
    big_out = jax.block_until_ready(linear_classifier(big_feats, weight, bias))
    big_ref = big_feats @ weight.T + bias
    assert big_out.shape == (big_b, num_classes)
    assert jnp.allclose(big_out, big_ref, atol=1e-3, rtol=1e-3)

    print("KERNEL_OK")
</pallas_src>

<mosaic_0001>
module attributes {stable_mosaic.version = 11 : i64} {
  func.func @_linear_kernel(%arg0: i32, %arg1: memref<8x512xf32, #tpu.memory_space<vmem>>, %arg2: memref<512x128xf32, #tpu.memory_space<vmem>>, %arg3: memref<1x128xf32, #tpu.memory_space<vmem>>, %arg4: memref<8x128xf32, #tpu.memory_space<vmem>>) attributes {dimension_semantics = [#tpu.dimension_semantics<parallel>], iteration_bounds = array<i64: 1>, scalar_prefetch = 0 : i64, scratch_operands = 0 : i64, tpu.core_type = #tpu.core_type<tc>, window_params = [{transform_indices = @transform_0, window_bounds = array<i64: 8, 512>}, {pipeline_mode = #tpu.pipeline_mode<synchronous>, transform_indices = @transform_1, window_bounds = array<i64: 512, 128>}, {pipeline_mode = #tpu.pipeline_mode<synchronous>, transform_indices = @transform_2, window_bounds = array<i64: 1, 128>}, {transform_indices = @transform_3, window_bounds = array<i64: 8, 128>}]} {
    %c0 = arith.constant 0 : index
    %c0_0 = arith.constant 0 : index
    %0 = vector.load %arg1[%c0, %c0_0] : memref<8x512xf32, #tpu.memory_space<vmem>>, vector<8x512xf32>
    %c0_1 = arith.constant 0 : index
    %c0_2 = arith.constant 0 : index
    %1 = vector.load %arg2[%c0_1, %c0_2] : memref<512x128xf32, #tpu.memory_space<vmem>>, vector<512x128xf32>
    %cst = arith.constant dense<0.000000e+00> : vector<8x128xf32>
    %2 = tpu.matmul %0, %1, %cst {dimension_numbers = #tpu.dot_dimension_numbers<[1], [0], [0], [1], [0, 0, 1, 1], [], []>} : vector<8x512xf32>, vector<512x128xf32>, vector<8x128xf32> -> vector<8x128xf32>
    %c0_3 = arith.constant 0 : index
    %c0_4 = arith.constant 0 : index
    %3 = vector.load %arg3[%c0_3, %c0_4] : memref<1x128xf32, #tpu.memory_space<vmem>>, vector<1x128xf32>
    %4 = vector.broadcast %3 : vector<1x128xf32> to vector<8x128xf32>
    %5 = arith.addf %2, %4 : vector<8x128xf32>
    %c0_5 = arith.constant 0 : index
    %c0_6 = arith.constant 0 : index
    %6 = vector.load %arg4[%c0_5, %c0_6] : memref<8x128xf32, #tpu.memory_space<vmem>>, vector<8x128xf32>
    tpu.vector_store %arg4[%c0_5, %c0_6], %5 {strides = array<i32>} : memref<8x128xf32, #tpu.memory_space<vmem>>, vector<8x128xf32>,
    return
  }
  func.func @transform_0(%arg0: i32) -> (i32, i32) {
    %c0_i32 = arith.constant 0 : i32
    %c0_i32_0 = arith.constant 0 : i32
    return %arg0, %c0_i32 : i32, i32
  }
  func.func @transform_1(%arg0: i32) -> (i32, i32) {
    %c0_i32 = arith.constant 0 : i32
    %c0_i32_0 = arith.constant 0 : i32
    %c0_i32_1 = arith.constant 0 : i32
    return %c0_i32, %c0_i32_0 : i32, i32
  }
  func.func @transform_2(%arg0: i32) -> (i32, i32) {
    %c0_i32 = arith.constant 0 : i32
    %c0_i32_0 = arith.constant 0 : i32
    %c0_i32_1 = arith.constant 0 : i32
    return %c0_i32, %c0_i32_0 : i32, i32
  }
  func.func @transform_3(%arg0: i32) -> (i32, i32) {
    %c0_i32 = arith.constant 0 : i32
    %c0_i32_0 = arith.constant 0 : i32
    return %arg0, %c0_i32 : i32, i32
  }
}

</mosaic_0001>

<bundles_post_ra>
// kernel: linear_classifier_apply.1
= control target key start
LH: loop header
LB: loop body
LE: loop exit
PB: predicated region body
PF: predicated region fallthrough
CT: control target
= control target key end

     0   :  { %8 = vsyncpa [#allocation3], 0  ;;  %s218_s15 = smov [#allocation2]   ;;  %s219_s17 = smov 128   ;;  %s262_s0 = inlined_call_operand.vmem [shape: f32[8,512], index: 0, kind: input, shape index: {}]   ;;  %s263_s1 = inlined_call_operand.hbm [shape: f32[512,128], index: 1, kind: input, shape index: {}]   ;;  %s264_s2 = inlined_call_operand.vmem [shape: f32[1,128], index: 2, kind: input, shape index: {}]   ;;  %s265_s3 = inlined_call_operand.vmem [shape: f32[8,128], index: 3, kind: output, shape index: {}]  }
   0x1   :  { %s15_s14 = sshll.u32 %s263_s1, 4  ;;  %s17_s16 = sshll.u32 %s218_s15, 4  ;;  %s16_s14 = int_to_ptr.hbm [resolvable:$true] %s15_s14  ;;  %s18_s16 = int_to_ptr.vmem [resolvable:$true] %s17_s16 }
   0x2   :  { %s220_s18 = smov 8  }
   0x3   :  { %23 = dma.hbm_to_vmem [thread:$0]  %s16_s14, 8192, %s18_s16, [#allocation3], %s219_s17, %s219_s17, %s220_s18  }
   0x4   :  { %216 = dma.done.wait [#allocation3], 8192  }
   0x5   :  { %217 = vsyncadd [#allocation3], 4294959104  ;;  %v81_v0 = vld [vmem:[#allocation2 + $0x178] sm:$0xff]  ;;  %v80_v2 = vld [vmem:[#allocation2 + $0x170] sm:$0xff] }
   0x6   :  { %v49_v1 = vld [vmem:[#allocation2 + $0x78] sm:$0xff]  ;;  %142 = vmatpush.msra.mxu2 %v81_v0  ;;  %v48_v4 = vld [vmem:[#allocation2 + $0x70] sm:$0xff]  ;;  %v79_v6 = vld [vmem:[#allocation2 + $0x168] sm:$0xff] }
   0x7   :  { %102 = vmatpush.msra.mxu0 %v49_v1  ;;  %v97_v3 = vld [vmem:[#allocation2 + $0x1f8] sm:$0xff]  ;;  %v96_v7 = vld [vmem:[#allocation2 + $0x1f0] sm:$0xff]  ;;  %v47_v8 = vld [vmem:[#allocation2 + $0x68] sm:$0xff] }
   0x8   :  { %v65_v5 = vld [vmem:[#allocation2 + $0xf8] sm:$0xff]  ;;  %162 = vmatpush.msra.mxu3 %v97_v3  ;;  %143 = vmatpush.msra.mxu2 %v80_v2  ;;  %v64_v9 = vld [vmem:[#allocation2 + $0xf0] sm:$0xff]  ;;  %v95_v10 = vld [vmem:[#allocation2 + $0x1e8] sm:$0xff] }
   0x9   :  { %122 = vmatpush.msra.mxu1 %v65_v5  ;;  %103 = vmatpush.msra.mxu0 %v48_v4  ;;  %v78_v11 = vld [vmem:[#allocation2 + $0x160] sm:$0xff]  ;;  %v63_v13 = vld [vmem:[#allocation2 + $0xe8] sm:$0xff]  ;;  %v77_v16 = vld [vmem:[#allocation2 + $0x158] sm:$0xff] }
   0xa   :  { %163 = vmatpush.msra.mxu3 %v96_v7  ;;  %v46_v12 = vld [vmem:[#allocation2 + $0x60] sm:$0xff]  ;;  %144 = vmatpush.msra.mxu2 %v79_v6  ;;  %v45_v17 = vld [vmem:[#allocation2 + $0x58] sm:$0xff]  ;;  %v76_v20 = vld [vmem:[#allocation2 + $0x150] sm:$0xff] }
   0xb   :  { %123 = vmatpush.msra.mxu1 %v64_v9  ;;  %104 = vmatpush.msra.mxu0 %v47_v8  ;;  %v94_v14 = vld [vmem:[#allocation2 + $0x1e0] sm:$0xff]  ;;  %v93_v18 = vld [vmem:[#allocation2 + $0x1d8] sm:$0xff]  ;;  %v44_v21 = vld [vmem:[#allocation2 + $0x50] sm:$0xff] }
   0xc   :  { %v62_v15 = vld [vmem:[#allocation2 + $0xe0] sm:$0xff]  ;;  %164 = vmatpush.msra.mxu3 %v95_v10  ;;  %145 = vmatpush.msra.mxu2 %v78_v11  ;;  %v61_v19 = vld [vmem:[#allocation2 + $0xd8] sm:$0xff]  ;;  %v92_v22 = vld [vmem:[#allocation2 + $0x1d0] sm:$0xff] }
   0xd   :  { %124 = vmatpush.msra.mxu1 %v63_v13  ;;  %105 = vmatpush.msra.mxu0 %v46_v12  ;;  %v60_v23 = vld [vmem:[#allocation2 + $0xd0] sm:$0xff]  ;;  %v75_v24 = vld [vmem:[#allocation2 + $0x148] sm:$0xff]  ;;  %v74_v28 = vld [vmem:[#allocation2 + $0x140] sm:$0xff] }
   0xe   :  { %165 = vmatpush.msra.mxu3 %v94_v14  ;;  %146 = vmatpush.msra.mxu2 %v77_v16  ;;  %v43_v25 = vld [vmem:[#allocation2 + $0x48] sm:$0xff]  ;;  %v42_v29 = vld [vmem:[#allocation2 + $0x40] sm:$0xff]  ;;  %v73_v32 = vld [vmem:[#allocation2 + $0x138] sm:$0xff] }
   0xf   :  { %125 = vmatpush.msra.mxu1 %v62_v15  ;;  %106 = vmatpush.msra.mxu0 %v45_v17  ;;  %v91_v26 = vld [vmem:[#allocation2 + $0x1c8] sm:$0xff]  ;;  %v90_v30 = vld [vmem:[#allocation2 + $0x1c0] sm:$0xff]  ;;  %v41_v33 = vld [vmem:[#allocation2 + $0x38] sm:$0xff] }
  0x10   :  { %166 = vmatpush.msra.mxu3 %v93_v18  ;;  %147 = vmatpush.msra.mxu2 %v76_v20  ;;  %v59_v27 = vld [vmem:[#allocation2 + $0xc8] sm:$0xff]  ;;  %v58_v31 = vld [vmem:[#allocation2 + $0xc0] sm:$0xff]  ;;  %v89_v34 = vld [vmem:[#allocation2 + $0x1b8] sm:$0xff] }
  0x11   :  { %126 = vmatpush.msra.mxu1 %v61_v19  ;;  %107 = vmatpush.msra.mxu0 %v44_v21  ;;  %v57_v35 = vld [vmem:[#allocation2 + $0xb8] sm:$0xff]  ;;  %v72_v36 = vld [vmem:[#allocation2 + $0x130] sm:$0xff]  ;;  %v71_v40 = vld [vmem:[#allocation2 + $0x128] sm:$0xff] }
  0x12   :  { %167 = vmatpush.msra.mxu3 %v92_v22  ;;  %148 = vmatpush.msra.mxu2 %v75_v24  ;;  %v40_v37 = vld [vmem:[#allocation2 + $0x30] sm:$0xff]  ;;  %v39_v41 = vld [vmem:[#allocation2 + $0x28] sm:$0xff]  ;;  %v70_v44 = vld [vmem:[#allocation2 + $0x120] sm:$0xff] }
  0x13   :  { %127 = vmatpush.msra.mxu1 %v60_v23  ;;  %108 = vmatpush.msra.mxu0 %v43_v25  ;;  %v88_v38 = vld [vmem:[#allocation2 + $0x1b0] sm:$0xff]  ;;  %v87_v42 = vld [vmem:[#allocation2 + $0x1a8] sm:$0xff]  ;;  %v38_v45 = vld [vmem:[#allocation2 + $0x20] sm:$0xff] }
  0x14   :  { %168 = vmatpush.msra.mxu3 %v91_v26  ;;  %149 = vmatpush.msra.mxu2 %v74_v28  ;;  %v56_v39 = vld [vmem:[#allocation2 + $0xb0] sm:$0xff]  ;;  %v55_v43 = vld [vmem:[#allocation2 + $0xa8] sm:$0xff]  ;;  %v86_v46 = vld [vmem:[#allocation2 + $0x1a0] sm:$0xff] }
  0x15   :  { %128 = vmatpush.msra.mxu1 %v59_v27  ;;  %109 = vmatpush.msra.mxu0 %v42_v29  ;;  %v54_v47 = vld [vmem:[#allocation2 + $0xa0] sm:$0xff]  ;;  %v69_v48 = vld [vmem:[#allocation2 + $0x118] sm:$0xff]  ;;  %v68_v52 = vld [vmem:[#allocation2 + $0x110] sm:$0xff] }
  0x16   :  { %169 = vmatpush.msra.mxu3 %v90_v30  ;;  %150 = vmatpush.msra.mxu2 %v73_v32  ;;  %v37_v49 = vld [vmem:[#allocation2 + $0x18] sm:$0xff]  ;;  %v36_v53 = vld [vmem:[#allocation2 + $0x10] sm:$0xff]  ;;  %v67_v56 = vld [vmem:[#allocation2 + $0x108] sm:$0xff] }
  0x17   :  { %129 = vmatpush.msra.mxu1 %v58_v31  ;;  %110 = vmatpush.msra.mxu0 %v41_v33  ;;  %v85_v50 = vld [vmem:[#allocation2 + $0x198] sm:$0xff]  ;;  %v84_v54 = vld [vmem:[#allocation2 + $0x190] sm:$0xff]  ;;  %v35_v57 = vld [vmem:[#allocation2 + $0x8] sm:$0xff] }
  0x18   :  { %170 = vmatpush.msra.mxu3 %v89_v34  ;;  %151 = vmatpush.msra.mxu2 %v72_v36  ;;  %v53_v51 = vld [vmem:[#allocation2 + $0x98] sm:$0xff]  ;;  %v52_v55 = vld [vmem:[#allocation2 + $0x90] sm:$0xff]  ;;  %v83_v58 = vld [vmem:[#allocation2 + $0x188] sm:$0xff] }
  0x19   :  { %130 = vmatpush.msra.mxu1 %v57_v35  ;;  %111 = vmatpush.msra.mxu0 %v40_v37  ;;  %v51_v59 = vld [vmem:[#allocation2 + $0x88] sm:$0xff]  ;;  %v66_v60 = vld [vmem:[#allocation2 + $0x100] sm:$0xff]  ;;  %v32_v62 = vld [vmem:[%s262_s0 + $0x10] sm:$0xff] }
  0x1a   :  { %171 = vmatpush.msra.mxu3 %v88_v38  ;;  %152 = vmatpush.msra.mxu2 %v71_v40  ;;  %v34_v61 = vld [vmem:[#allocation2] sm:$0xff]  ;;  %v33_v1 = vld [vmem:[%s262_s0 + $0x18] sm:$0xff]  ;;  %v31_v3 = vld [vmem:[%s262_s0 + $0x8] sm:$0xff] }
  0x1b   :  { %131 = vmatpush.msra.mxu1 %v56_v39  ;;  %112 = vmatpush.msra.mxu0 %v39_v41  ;;  %v82_v63 = vld [vmem:[#allocation2 + $0x180] sm:$0xff] }
  0x1c   :  { %172 = vmatpush.msra.mxu3 %v87_v42  ;;  %153 = vmatpush.msra.mxu2 %v70_v44  ;;  %v30_v0 = vld [vmem:[%s262_s0] sm:$0xff] }
  0x1d   :  { %132 = vmatpush.msra.mxu1 %v55_v43  ;;  %113 = vmatpush.msra.mxu0 %v38_v45  ;;  %v50_v2 = vld [vmem:[#allocation2 + $0x80] sm:$0xff] }
  0x1e   :  { %173 = vmatpush.msra.mxu3 %v86_v46  ;;  %154 = vmatpush.msra.mxu2 %v69_v48  ;;  %v191_v4 = vld [vmem:[%s264_s2] ss:$0 sm:$0xff] }
  0x1f   :  { %133 = vmatpush.msra.mxu1 %v54_v47  ;;  %114 = vmatpush.msra.mxu0 %v37_v49 }
  0x20   :  { %174 = vmatpush.msra.mxu3 %v85_v50  ;;  %155 = vmatpush.msra.mxu2 %v68_v52 }
  0x21   :  { %134 = vmatpush.msra.mxu1 %v53_v51  ;;  %115 = vmatpush.msra.mxu0 %v36_v53 }
  0x22   :  { %175 = vmatpush.msra.mxu3 %v84_v54  ;;  %156 = vmatpush.msra.mxu2 %v67_v56 }
  0x23   :  { %135 = vmatpush.msra.mxu1 %v52_v55  ;;  %116 = vmatpush.msra.mxu0 %v35_v57 }
  0x24   :  { %176 = vmatpush.msra.mxu3 %v83_v58  ;;  %157 = vmatpush.msra.mxu2 %v66_v60 }
  0x25   :  { %136 = vmatpush.msra.mxu1 %v51_v59  ;;  %117 = vmatpush.msra.mxu0 %v34_v61 }
  0x26   :  { %158 = vmatmul.f32.vlgmr.msra.gmra.mxu2 %v32_v62  ;;  %177 = vmatpush.msra.mxu3 %v82_v63 }
  0x27   :  { %118 = vmatmul.f32.vlgmr.msra.gmra.mxu0 %v30_v0  ;;  %178 = vmatmul.f32.vlgmr.msra.gmra.mxu3 %v33_v1 }
  0x28   :  { %137 = vmatpush.msra.mxu1 %v50_v2 }
  0x29   :  { %138 = vmatmul.f32.vlgmr.msra.gmra.mxu1 %v31_v3 }
  0xa4   :  { %v119_v5 = vpop.f32.mrf.mxu0 }
  0xa5   :  { %v120_v6 = vadd.f32 %v191_v4, %v119_v5 }
  0xa6   :  { %v139_v7 = vpop.f32.mrf.mxu1 }
  0xa7   :  { %v140_v8 = vadd.f32 %v139_v7, %v120_v6 }
  0xa9   :  { %v159_v9 = vpop.f32.mrf.mxu2 }
  0xaa   :  { %v160_v10 = vadd.f32 %v159_v9, %v140_v8  ;;  %v179_v11 = vpop.f32.mrf.mxu3 }
  0xac   :  { %v180_v12 = vadd.f32 %v179_v11, %v160_v10 }
  0xae   :  { %182 = vst [vmem:[%s265_s3] sm:$0xff] %v180_v12 }
  0xaf   :  { %187 = vsyncpa [#allocation3], 1 }

</bundles_post_ra>
